<compile_context>
chip_gen: v6e
topology: v6e:2x2x1
jax: 0.10.0
libtpu: 0.0.40
codegen_flags: <defaults>
</compile_context>

<pallas_src>
import jax
import jax.numpy as jnp
from jax.experimental import pallas as pl
from jax.experimental.pallas import tpu as pltpu

REP_DIM = 32       # resnet.rep_dim
FEATURE_DIM = 16   # feature_dim
CLASS_NUM = 10     # class_num
CONV_CH = 8        # stand-in backbone conv width
IN_CH = 3

B_TILE = 16        # images per grid step (M = B_TILE*H = 256 on v6e/v7x)


def _round_up(n, m):
    return ((n + m - 1) // m) * m


# ---------------------------------------------------------------------------
# Fused Pallas kernel (one grid step = B_TILE images, full network forward)
# ---------------------------------------------------------------------------
def _make_network_kernel(b_tile, H, lanes):
    def kernel(x_ref, tw_ref, cb_ref, fw_ref, fb_ref,
               w1_ref, b1_ref, w2_ref, b2_ref, out_ref):
        # x_ref : [b_tile*H, 3*(W+2)*Cin]  row-packed padded image rows
        # tw_ref: [3*(W+2)*Cin, W*CONV_CH] Toeplitz-packed conv weights
        # Single aligned conv matmul (no sublane-offset slices).
        conv = jnp.dot(x_ref[...], tw_ref[...],
                       preferred_element_type=jnp.float32)
        conv = jnp.maximum(conv + cb_ref[...], 0.0)          # [b_tile*H, lanes]

        # Global average pool via sublane/XLU reduction (1/(H*W) folded in fw).
        pooled = jnp.sum(conv.reshape(b_tile, H, lanes), axis=1)  # [b_tile, lanes]
        h = (jnp.dot(pooled, fw_ref[...], preferred_element_type=jnp.float32)
             + fb_ref[...])                                   # [b_tile, REP_DIM]

        # Fused projectors: concatenated layer-1, block-diagonal layer-2.
        t = jnp.maximum(
            jnp.dot(h, w1_ref[...], preferred_element_type=jnp.float32)
            + b1_ref[...], 0.0)                               # [b_tile, 2*REP]
        out = (jnp.dot(t, w2_ref[...], preferred_element_type=jnp.float32)
               + b2_ref[...])                                 # [b_tile, FEAT+CLS]

        z = out[:, :FEATURE_DIM]
        logits = out[:, FEATURE_DIM:]

        # instance head: F.normalize(dim=1) (torch eps=1e-12 clamp on the norm)
        norm = jnp.sqrt(jnp.sum(z * z, axis=1, keepdims=True))
        out_ref[:, :FEATURE_DIM] = z / jnp.maximum(norm, 1e-12)

        # cluster head: Softmax(dim=1) — exact division so rows sum to 1
        m = jnp.max(logits, axis=1, keepdims=True)
        e = jnp.exp(logits - m)
        out_ref[:, FEATURE_DIM:] = e / jnp.sum(e, axis=1, keepdims=True)

    return kernel


# ---------------------------------------------------------------------------
# One-time host-side weight preparation (hoisted out of the forward path)
# ---------------------------------------------------------------------------
def prepare_params(params, H, W):
    K = params["conv_w"]                                      # [3,3,Cin,Cout]
    Cin = K.shape[2]
    lanes = W * CONV_CH

    # Toeplitz-pack the 3x3 conv kernel with the dh shift folded in:
    # rows are [dh, p, c]-major, columns are [w, f] (w-major, f-minor).
    P = (jnp.arange(W)[:, None, None] + jnp.arange(3)[None, :, None]
         == jnp.arange(W + 2)[None, None, :]).astype(jnp.float32)  # [W,3,W+2]
    tw = jnp.einsum("wdp,hdcf->hpcwf", P, K).reshape(3 * (W + 2) * Cin, lanes)

    cb = jnp.tile(params["conv_b"], (1, W))                   # [1, W*Cout]
    # feat Linear tiled across W and pre-scaled by 1/(H*W) (exact affine fold)
    fw = jnp.tile(params["feat_w"], (W, 1)) * (1.0 / float(H * W))
    fb = params["feat_b"]

    # Fused projector weights
    w1 = jnp.concatenate([params["w1i"], params["w1c"]], axis=1)  # [REP, 2*REP]
    b1 = jnp.concatenate([params["b1i"], params["b1c"]], axis=1)  # [1, 2*REP]
    w2 = jnp.zeros((2 * REP_DIM, FEATURE_DIM + CLASS_NUM), jnp.float32)
    w2 = w2.at[:REP_DIM, :FEATURE_DIM].set(params["w2i"])
    w2 = w2.at[REP_DIM:, FEATURE_DIM:].set(params["w2c"])
    b2 = jnp.concatenate([params["b2i"], params["b2c"]], axis=1)  # [1, FEAT+CLS]

    return dict(tw=tw, cb=cb, fw=fw, fb=fb, w1=w1, b1=b1, w2=w2, b2=b2)


# ---------------------------------------------------------------------------
# JAX wrapper
# ---------------------------------------------------------------------------
def network_apply(prep, x_nchw, b_tile=None):
    """Full fused forward for a batch of NCHW images -> (z, c)."""
    B, Cin, H, W = x_nchw.shape
    lanes = W * CONV_CH
    K3 = 3 * (W + 2) * Cin

    # Clamp B_TILE for tiny batches (keeps the block's sublane dim a multiple
    # of 8 and avoids wasting a full 16-image tile on a 4-image demo batch).
    if b_tile is None:
        b_tile = min(B_TILE, _round_up(B, 8))
    Bp = _round_up(B, b_tile)

    # NCHW -> padded NHWC, then pack the 3 conv input rows per output row
    # along lanes so the kernel does one aligned matmul (no sublane shifts).
    x = jnp.transpose(x_nchw, (0, 2, 3, 1)).astype(jnp.float32)
    xpad = jnp.pad(x, ((0, 0), (1, 1), (1, 1), (0, 0)))       # [B, H+2, W+2, C]
    xrows = jnp.stack([xpad[:, dh:dh + H] for dh in range(3)], axis=2)
    xrows = xrows.reshape(B, H, K3)
    if Bp != B:
        xrows = jnp.pad(xrows, ((0, Bp - B), (0, 0), (0, 0)))
    lhs = xrows.reshape(Bp * H, K3)                           # [Bp*H, K3]

    kernel = _make_network_kernel(b_tile, H, lanes)
    out = pl.pallas_call(
        kernel,
        out_shape=jax.ShapeDtypeStruct((Bp, FEATURE_DIM + CLASS_NUM),
                                       jnp.float32),
        grid=(Bp // b_tile,),
        in_specs=[
            pl.BlockSpec((b_tile * H, K3), lambda b: (b, 0)),
            pl.BlockSpec((K3, lanes), lambda b: (0, 0)),
            pl.BlockSpec((1, lanes), lambda b: (0, 0)),
            pl.BlockSpec((lanes, REP_DIM), lambda b: (0, 0)),
            pl.BlockSpec((1, REP_DIM), lambda b: (0, 0)),
            pl.BlockSpec((REP_DIM, 2 * REP_DIM), lambda b: (0, 0)),
            pl.BlockSpec((1, 2 * REP_DIM), lambda b: (0, 0)),
            pl.BlockSpec((2 * REP_DIM, FEATURE_DIM + CLASS_NUM),
                         lambda b: (0, 0)),
            pl.BlockSpec((1, FEATURE_DIM + CLASS_NUM), lambda b: (0, 0)),
        ],
        out_specs=pl.BlockSpec((b_tile, FEATURE_DIM + CLASS_NUM),
                               lambda b: (b, 0)),
        compiler_params=pltpu.CompilerParams(
            dimension_semantics=("parallel",),   # batch grid splits across TCs
            vmem_limit_bytes=32 * 1024 * 1024,
        ),
    )(lhs, prep["tw"], prep["cb"], prep["fw"], prep["fb"],
      prep["w1"], prep["b1"], prep["w2"], prep["b2"])

    out = out[:B]
    return out[:, :FEATURE_DIM], out[:, FEATURE_DIM:]


def network_forward(prep, x_i, x_j):
    """Mirrors Network.forward: returns (z_i, z_j, c_i, c_j)."""
    x = jnp.concatenate([x_i, x_j], axis=0)    # batch both views: 1 kernel call
    z, c = network_apply(prep, x)
    B = x_i.shape[0]
    return z[:B], z[B:], c[:B], c[B:]


def init_params(key):
    ks = jax.random.split(key, 6)

    def lin(k, fan_in, shape):
        return jax.random.normal(k, shape, jnp.float32) / jnp.sqrt(float(fan_in))

    # Linear weights stored as [in, out] (transposed vs. torch's [out, in]).
    return dict(
        conv_w=lin(ks[0], 9 * IN_CH, (3, 3, IN_CH, CONV_CH)),
        conv_b=jnp.zeros((1, CONV_CH), jnp.float32),
        feat_w=lin(ks[1], CONV_CH, (CONV_CH, REP_DIM)),
        feat_b=jnp.zeros((1, REP_DIM), jnp.float32),
        w1i=lin(ks[2], REP_DIM, (REP_DIM, REP_DIM)),
        b1i=0.01 * jnp.ones((1, REP_DIM), jnp.float32),
        w2i=lin(ks[3], REP_DIM, (REP_DIM, FEATURE_DIM)),
        b2i=0.01 * jnp.ones((1, FEATURE_DIM), jnp.float32),
        w1c=lin(ks[4], REP_DIM, (REP_DIM, REP_DIM)),
        b1c=0.01 * jnp.ones((1, REP_DIM), jnp.float32),
        w2c=lin(ks[5], REP_DIM, (REP_DIM, CLASS_NUM)),
        b2c=0.01 * jnp.ones((1, CLASS_NUM), jnp.float32),
    )


if __name__ == "__main__":
    key = jax.random.PRNGKey(0)
    k_p, k_i, k_j = jax.random.split(key, 3)
    params = init_params(k_p)
    prep = prepare_params(params, H=16, W=16)   # one-time weight preparation

    x_i = jax.random.normal(k_i, (2, IN_CH, 16, 16), jnp.float32)  # NCHW
    x_j = jax.random.normal(k_j, (2, IN_CH, 16, 16), jnp.float32)

    fwd = jax.jit(network_forward)
    z_i, z_j, c_i, c_j = fwd(prep, x_i, x_j)
    jax.block_until_ready((z_i, z_j, c_i, c_j))

    assert z_i.shape == (2, FEATURE_DIM) and z_j.shape == (2, FEATURE_DIM)
    assert c_i.shape == (2, CLASS_NUM) and c_j.shape == (2, CLASS_NUM)
    # sanity: softmax rows sum to 1, z rows are unit-norm
    assert jnp.allclose(jnp.sum(c_i, axis=1), 1.0, atol=1e-5)
    assert jnp.allclose(jnp.sum(c_j, axis=1), 1.0, atol=1e-5)
    assert jnp.allclose(jnp.sum(z_i * z_i, axis=1), 1.0, atol=1e-4)
    assert jnp.allclose(jnp.sum(z_j * z_j, axis=1), 1.0, atol=1e-4)

    print("KERNEL_OK")
</pallas_src>

<mosaic_0001>
module attributes {stable_mosaic.version = 11 : i64} {
  func.func @kernel(%arg0: i32, %arg1: memref<128x162xf32, #tpu.memory_space<vmem>>, %arg2: memref<162x128xf32, #tpu.memory_space<vmem>>, %arg3: memref<1x128xf32, #tpu.memory_space<vmem>>, %arg4: memref<128x32xf32, #tpu.memory_space<vmem>>, %arg5: memref<1x32xf32, #tpu.memory_space<vmem>>, %arg6: memref<32x64xf32, #tpu.memory_space<vmem>>, %arg7: memref<1x64xf32, #tpu.memory_space<vmem>>, %arg8: memref<64x26xf32, #tpu.memory_space<vmem>>, %arg9: memref<1x26xf32, #tpu.memory_space<vmem>>, %arg10: memref<8x26xf32, #tpu.memory_space<vmem>>) attributes {dimension_semantics = [#tpu.dimension_semantics<parallel>], iteration_bounds = array<i64: 1>, scalar_prefetch = 0 : i64, scratch_operands = 0 : i64, tpu.core_type = #tpu.core_type<tc>, window_params = [{transform_indices = @transform_0, window_bounds = array<i64: 128, 162>}, {pipeline_mode = #tpu.pipeline_mode<synchronous>, transform_indices = @transform_1, window_bounds = array<i64: 162, 128>}, {pipeline_mode = #tpu.pipeline_mode<synchronous>, transform_indices = @transform_2, window_bounds = array<i64: 1, 128>}, {pipeline_mode = #tpu.pipeline_mode<synchronous>, transform_indices = @transform_3, window_bounds = array<i64: 128, 32>}, {pipeline_mode = #tpu.pipeline_mode<synchronous>, transform_indices = @transform_4, window_bounds = array<i64: 1, 32>}, {pipeline_mode = #tpu.pipeline_mode<synchronous>, transform_indices = @transform_5, window_bounds = array<i64: 32, 64>}, {pipeline_mode = #tpu.pipeline_mode<synchronous>, transform_indices = @transform_6, window_bounds = array<i64: 1, 64>}, {pipeline_mode = #tpu.pipeline_mode<synchronous>, transform_indices = @transform_7, window_bounds = array<i64: 64, 26>}, {pipeline_mode = #tpu.pipeline_mode<synchronous>, transform_indices = @transform_8, window_bounds = array<i64: 1, 26>}, {transform_indices = @transform_9, window_bounds = array<i64: 8, 26>}]} {
    %c0 = arith.constant 0 : index
    %c0_0 = arith.constant 0 : index
    %0 = vector.load %arg1[%c0, %c0_0] : memref<128x162xf32, #tpu.memory_space<vmem>>, vector<128x162xf32>
    %c0_1 = arith.constant 0 : index
    %c0_2 = arith.constant 0 : index
    %1 = vector.load %arg2[%c0_1, %c0_2] : memref<162x128xf32, #tpu.memory_space<vmem>>, vector<162x128xf32>
    %cst = arith.constant dense<0.000000e+00> : vector<128x128xf32>
    %2 = tpu.matmul %0, %1, %cst {dimension_numbers = #tpu.dot_dimension_numbers<[1], [0], [0], [1], [0, 0, 1, 1], [], []>} : vector<128x162xf32>, vector<162x128xf32>, vector<128x128xf32> -> vector<128x128xf32>
    %c0_3 = arith.constant 0 : index
    %c0_4 = arith.constant 0 : index
    %3 = vector.load %arg3[%c0_3, %c0_4] : memref<1x128xf32, #tpu.memory_space<vmem>>, vector<1x128xf32>
    %4 = vector.broadcast %3 : vector<1x128xf32> to vector<128x128xf32>
    %5 = arith.addf %2, %4 : vector<128x128xf32>
    %cst_5 = arith.constant 0.000000e+00 : f32
    %6 = vector.broadcast %cst_5 : f32 to vector<128x128xf32>
    %7 = arith.maximumf %5, %6 : vector<128x128xf32>
    %8 = vector.shape_cast %7 : vector<128x128xf32> to vector<8x16x128xf32>
    %cst_6 = arith.constant dense<0.000000e+00> : vector<8x128xf32>
    %9 = vector.multi_reduction <add>, %8, %cst_6 [1] : vector<8x16x128xf32> to vector<8x128xf32>
    %c0_7 = arith.constant 0 : index
    %c0_8 = arith.constant 0 : index
    %10 = vector.load %arg4[%c0_7, %c0_8] : memref<128x32xf32, #tpu.memory_space<vmem>>, vector<128x32xf32>
    %cst_9 = arith.constant dense<0.000000e+00> : vector<8x32xf32>
    %11 = tpu.matmul %9, %10, %cst_9 {dimension_numbers = #tpu.dot_dimension_numbers<[1], [0], [0], [1], [0, 0, 1, 1], [], []>} : vector<8x128xf32>, vector<128x32xf32>, vector<8x32xf32> -> vector<8x32xf32>
    %c0_10 = arith.constant 0 : index
    %c0_11 = arith.constant 0 : index
    %12 = vector.load %arg5[%c0_10, %c0_11] : memref<1x32xf32, #tpu.memory_space<vmem>>, vector<1x32xf32>
    %13 = vector.broadcast %12 : vector<1x32xf32> to vector<8x32xf32>
    %14 = arith.addf %11, %13 : vector<8x32xf32>
    %c0_12 = arith.constant 0 : index
    %c0_13 = arith.constant 0 : index
    %15 = vector.load %arg6[%c0_12, %c0_13] : memref<32x64xf32, #tpu.memory_space<vmem>>, vector<32x64xf32>
    %cst_14 = arith.constant dense<0.000000e+00> : vector<8x64xf32>
    %16 = tpu.matmul %14, %15, %cst_14 {dimension_numbers = #tpu.dot_dimension_numbers<[1], [0], [0], [1], [0, 0, 1, 1], [], []>} : vector<8x32xf32>, vector<32x64xf32>, vector<8x64xf32> -> vector<8x64xf32>
    %c0_15 = arith.constant 0 : index
    %c0_16 = arith.constant 0 : index
    %17 = vector.load %arg7[%c0_15, %c0_16] : memref<1x64xf32, #tpu.memory_space<vmem>>, vector<1x64xf32>
    %18 = vector.broadcast %17 : vector<1x64xf32> to vector<8x64xf32>
    %19 = arith.addf %16, %18 : vector<8x64xf32>
    %cst_17 = arith.constant 0.000000e+00 : f32
    %20 = vector.broadcast %cst_17 : f32 to vector<8x64xf32>
    %21 = arith.maximumf %19, %20 : vector<8x64xf32>
    %c0_18 = arith.constant 0 : index
    %c0_19 = arith.constant 0 : index
    %22 = vector.load %arg8[%c0_18, %c0_19] : memref<64x26xf32, #tpu.memory_space<vmem>>, vector<64x26xf32>
    %cst_20 = arith.constant dense<0.000000e+00> : vector<8x26xf32>
    %23 = tpu.matmul %21, %22, %cst_20 {dimension_numbers = #tpu.dot_dimension_numbers<[1], [0], [0], [1], [0, 0, 1, 1], [], []>} : vector<8x64xf32>, vector<64x26xf32>, vector<8x26xf32> -> vector<8x26xf32>
    %c0_21 = arith.constant 0 : index
    %c0_22 = arith.constant 0 : index
    %24 = vector.load %arg9[%c0_21, %c0_22] : memref<1x26xf32, #tpu.memory_space<vmem>>, vector<1x26xf32>
    %25 = vector.broadcast %24 : vector<1x26xf32> to vector<8x26xf32>
    %26 = arith.addf %23, %25 : vector<8x26xf32>
    %27 = vector.extract_strided_slice %26 {offsets = [0, 0], sizes = [8, 16], strides = [1, 1]} : vector<8x26xf32> to vector<8x16xf32>
    %28 = vector.extract_strided_slice %26 {offsets = [0, 16], sizes = [8, 10], strides = [1, 1]} : vector<8x26xf32> to vector<8x10xf32>
    %29 = arith.mulf %27, %27 : vector<8x16xf32>
    %cst_23 = arith.constant dense<0.000000e+00> : vector<8xf32>
    %30 = vector.multi_reduction <add>, %29, %cst_23 [1] : vector<8x16xf32> to vector<8xf32>
    %31 = vector.shape_cast %30 : vector<8xf32> to vector<8x1xf32>
    %32 = math.sqrt %31 : vector<8x1xf32>
    %cst_24 = arith.constant 9.99999996E-13 : f32
    %33 = vector.broadcast %cst_24 : f32 to vector<8x1xf32>
    %34 = arith.maximumf %32, %33 : vector<8x1xf32>
    %35 = vector.broadcast %34 : vector<8x1xf32> to vector<8x16xf32>
    %36 = arith.divf %27, %35 : vector<8x16xf32>
    %c0_25 = arith.constant 0 : index
    %c0_26 = arith.constant 0 : index
    %37 = vector.load %arg10[%c0_25, %c0_26] : memref<8x26xf32, #tpu.memory_space<vmem>>, vector<8x16xf32>
    tpu.vector_store %arg10[%c0_25, %c0_26], %36 {strides = array<i32>} : memref<8x26xf32, #tpu.memory_space<vmem>>, vector<8x16xf32>,
    %cst_27 = arith.constant dense<0xFF800000> : vector<8xf32>
    %38 = vector.multi_reduction <maximumf>, %28, %cst_27 [1] : vector<8x10xf32> to vector<8xf32>
    %39 = vector.shape_cast %38 : vector<8xf32> to vector<8x1xf32>
    %40 = vector.broadcast %39 : vector<8x1xf32> to vector<8x10xf32>
    %41 = arith.subf %28, %40 : vector<8x10xf32>
    %42 = math.exp %41 : vector<8x10xf32>
    %cst_28 = arith.constant dense<0.000000e+00> : vector<8xf32>
    %43 = vector.multi_reduction <add>, %42, %cst_28 [1] : vector<8x10xf32> to vector<8xf32>
    %44 = vector.shape_cast %43 : vector<8xf32> to vector<8x1xf32>
    %45 = vector.broadcast %44 : vector<8x1xf32> to vector<8x10xf32>
    %46 = arith.divf %42, %45 : vector<8x10xf32>
    %c0_29 = arith.constant 0 : index
    %c16 = arith.constant 16 : index
    %47 = vector.load %arg10[%c0_29, %c16] : memref<8x26xf32, #tpu.memory_space<vmem>>, vector<8x10xf32>
    tpu.vector_store %arg10[%c0_29, %c16], %46 {strides = array<i32>} : memref<8x26xf32, #tpu.memory_space<vmem>>, vector<8x10xf32>,
    return
  }
  func.func @transform_0(%arg0: i32) -> (i32, i32) {
    %c0_i32 = arith.constant 0 : i32
    %c0_i32_0 = arith.constant 0 : i32
    return %arg0, %c0_i32 : i32, i32
  }
  func.func @transform_1(%arg0: i32) -> (i32, i32) {
    %c0_i32 = arith.constant 0 : i32
    %c0_i32_0 = arith.constant 0 : i32
    %c0_i32_1 = arith.constant 0 : i32
    return %c0_i32, %c0_i32_0 : i32, i32
  }
  func.func @transform_2(%arg0: i32) -> (i32, i32) {
    %c0_i32 = arith.constant 0 : i32
    %c0_i32_0 = arith.constant 0 : i32
    %c0_i32_1 = arith.constant 0 : i32
    return %c0_i32, %c0_i32_0 : i32, i32
  }
  func.func @transform_3(%arg0: i32) -> (i32, i32) {
    %c0_i32 = arith.constant 0 : i32
    %c0_i32_0 = arith.constant 0 : i32
    %c0_i32_1 = arith.constant 0 : i32
    return %c0_i32, %c0_i32_0 : i32, i32
  }
  func.func @transform_4(%arg0: i32) -> (i32, i32) {
    %c0_i32 = arith.constant 0 : i32
    %c0_i32_0 = arith.constant 0 : i32
    %c0_i32_1 = arith.constant 0 : i32
    return %c0_i32, %c0_i32_0 : i32, i32
  }
  func.func @transform_5(%arg0: i32) -> (i32, i32) {
    %c0_i32 = arith.constant 0 : i32
    %c0_i32_0 = arith.constant 0 : i32
    %c0_i32_1 = arith.constant 0 : i32
    return %c0_i32, %c0_i32_0 : i32, i32
  }
  func.func @transform_6(%arg0: i32) -> (i32, i32) {
    %c0_i32 = arith.constant 0 : i32
    %c0_i32_0 = arith.constant 0 : i32
    %c0_i32_1 = arith.constant 0 : i32
    return %c0_i32, %c0_i32_0 : i32, i32
  }
  func.func @transform_7(%arg0: i32) -> (i32, i32) {
    %c0_i32 = arith.constant 0 : i32
    %c0_i32_0 = arith.constant 0 : i32
    %c0_i32_1 = arith.constant 0 : i32
    return %c0_i32, %c0_i32_0 : i32, i32
  }
  func.func @transform_8(%arg0: i32) -> (i32, i32) {
    %c0_i32 = arith.constant 0 : i32
    %c0_i32_0 = arith.constant 0 : i32
    %c0_i32_1 = arith.constant 0 : i32
    return %c0_i32, %c0_i32_0 : i32, i32
  }
  func.func @transform_9(%arg0: i32) -> (i32, i32) {
    %c0_i32 = arith.constant 0 : i32
    %c0_i32_0 = arith.constant 0 : i32
    return %arg0, %c0_i32 : i32, i32
  }
}

</mosaic_0001>

<bundles_post_ra>
// kernel: network_forward.1
= control target key start
LH: loop header
LB: loop body
LE: loop exit
PB: predicated region body
PF: predicated region fallthrough
CT: control target
= control target key end

     0   :  { %v821_v0 = vmov 0.0   ;;  %vm92_vm0 = vcmask 277504   ;;  %vm141_vm1 = vcmask 1041408   ;;  %vm822_vm2 = vmmov 0   ;;  %s1228_s1 = inlined_call_operand.vmem [shape: f32[162,128], index: 1, kind: input, shape index: {}]   ;;  %s1229_s0 = inlined_call_operand.vmem [shape: f32[128,162], index: 0, kind: input, shape index: {}]   ;;  %s1230_s3 = inlined_call_operand.vmem [shape: f32[128,32], index: 3, kind: input, shape index: {}]   ;;  %s1231_s2 = inlined_call_operand.vmem [shape: f32[1,128], index: 2, kind: input, shape index: {}]   ;;  %s1232_s5 = inlined_call_operand.vmem [shape: f32[32,64], index: 5, kind: input, shape index: {}]   ;;  %s1233_s4 = inlined_call_operand.vmem [shape: f32[1,32], index: 4, kind: input, shape index: {}]   ;;  %s1234_s7 = inlined_call_operand.vmem [shape: f32[64,26], index: 7, kind: input, shape index: {}]   ;;  %s1235_s6 = inlined_call_operand.vmem [shape: f32[1,64], index: 6, kind: input, shape index: {}]   ;;  %s1236_s8 = inlined_call_operand.vmem [shape: f32[1,26], index: 8, kind: input, shape index: {}]   ;;  %s1237_s9 = inlined_call_operand.vmem [shape: f32[8,26], index: 9, kind: output, shape index: {}]  }
   0x1   :  { %145 = vmatprep.subr.mxu0 %v821_v0  ;;  %v79_v1 = vld [vmem:[%s1228_s1 + $0x78] sm:$0xff]  ;;  %v78_v2 = vld [vmem:[%s1228_s1 + $0x70] sm:$0xff]  ;;  %745 = vmatprep.subr.mxu1 %v821_v0  ;;  %v77_v3 = vld [vmem:[%s1228_s1 + $0x68] sm:$0xff]  ;;  %vm393_vm3 = vcmask 1041409   ;;  %vm395_vm4 = vcmask 1042434   ;;  %vm397_vm5 = vcmask 1043459  }
   0x2   :  { %146 = vmatpush1.msra.mxu0 %v79_v1  ;;  %v76_v4 = vld [vmem:[%s1228_s1 + $0x60] sm:$0xff]  ;;  %v75_v5 = vld [vmem:[%s1228_s1 + $0x58] sm:$0xff]  ;;  %v33_v6 = vld [vmem:[%s1229_s0 + $0x8] sm:$0xff]  ;;  %777 = vmatprep.mubr.msk.f32.mxu1 %vm822_vm2, %v821_v0  ;;  %vm399_vm6 = vcmask 1044484   ;;  %vm401_vm7 = vcmask 1045509   ;;  %vm403_vm8 = vcmask 1046534  }
   0x3   :  { %147 = vmatprep.subr.mxu0 %v821_v0  ;;  %v74_v7 = vld [vmem:[%s1228_s1 + $0x50] sm:$0xff]  ;;  %693 = vmatprep.mubr.msk.f32.mxu0 %vm92_vm0, %v33_v6  ;;  %v73_v8 = vld [vmem:[%s1228_s1 + $0x48] sm:$0xff]  ;;  %v72_v9 = vld [vmem:[%s1228_s1 + $0x40] sm:$0xff]  ;;  %vm405_vm9 = vcmask 1047559   ;;  %vm489_vm10 = vcmask 261120   ;;  %vm579_vm11 = vcmask 523264  }
   0x4   :  { %148 = vmatpush1.msra.mxu0 %v78_v2  ;;  %v71_v10 = vld [vmem:[%s1228_s1 + $0x38] sm:$0xff]  ;;  %v70_v11 = vld [vmem:[%s1228_s1 + $0x30] sm:$0xff]  ;;  %v69_v12 = vld [vmem:[%s1228_s1 + $0x28] sm:$0xff]  ;;  %vm669_vm12 = vcmask 212096   ;;  %vm654_vm13 = vcmask 130048  }
   0x5   :  { %149 = vmatprep.subr.mxu0 %v821_v0  ;;  %v68_v13 = vld [vmem:[%s1228_s1 + $0x20] sm:$0xff]  ;;  %v67_v14 = vld [vmem:[%s1228_s1 + $0x18] sm:$0xff]  ;;  %v66_v15 = vld [vmem:[%s1228_s1 + $0x10] sm:$0xff] }
   0x6   :  { %150 = vmatpush1.msra.mxu0 %v77_v3  ;;  %v65_v16 = vld [vmem:[%s1228_s1 + $0x8] sm:$0xff]  ;;  %v64_v17 = vld [vmem:[%s1228_s1] sm:$0xff]  ;;  %v83_v19 = vld [vmem:[%s1228_s1 + $0x98] sm:$0xff] }
   0x7   :  { %151 = vmatprep.subr.mxu0 %v821_v0  ;;  %v84_v18 = vld [vmem:[%s1228_s1 + $0xa0] sm:$0x3]  ;;  %v82_v20 = vld [vmem:[%s1228_s1 + $0x90] sm:$0xff]  ;;  %v81_v21 = vld [vmem:[%s1228_s1 + $0x88] sm:$0xff] }
   0x8   :  { %152 = vmatpush1.msra.mxu0 %v76_v4  ;;  %v80_v22 = vld [vmem:[%s1228_s1 + $0x80] sm:$0xff]  ;;  %v35_v24 = vld [vmem:[%s1229_s0 + $0x18] sm:$0xff]  ;;  %v34_v25 = vld [vmem:[%s1229_s0 + $0x10] sm:$0xff] }
   0x9   :  { %153 = vmatprep.subr.mxu0 %v821_v0  ;;  %v32_v23 = vld [vmem:[%s1229_s0] sm:$0xff]  ;;  %v37_v26 = vld [vmem:[%s1229_s0 + $0x28] sm:$0xff]  ;;  %v39_v28 = vld [vmem:[%s1229_s0 + $0x38] sm:$0xff] }
   0xa   :  { %154 = vmatpush1.msra.mxu0 %v75_v5  ;;  %v36_v27 = vld [vmem:[%s1229_s0 + $0x20] sm:$0xff]  ;;  %v38_v29 = vld [vmem:[%s1229_s0 + $0x30] sm:$0xff]  ;;  %v41_v30 = vld [vmem:[%s1229_s0 + $0x48] sm:$0xff] }
   0xb   :  { %155 = vmatprep.subr.mxu0 %v821_v0  ;;  %v40_v31 = vld [vmem:[%s1229_s0 + $0x40] sm:$0xff]  ;;  %v43_v32 = vld [vmem:[%s1229_s0 + $0x58] sm:$0xff]  ;;  %v42_v33 = vld [vmem:[%s1229_s0 + $0x50] sm:$0xff] }
   0xc   :  { %156 = vmatpush1.msra.mxu0 %v74_v7  ;;  %v45_v34 = vld [vmem:[%s1229_s0 + $0x68] sm:$0xff]  ;;  %v44_v35 = vld [vmem:[%s1229_s0 + $0x60] sm:$0xff]  ;;  %v47_v36 = vld [vmem:[%s1229_s0 + $0x78] sm:$0xff] }
   0xd   :  { %157 = vmatprep.subr.mxu0 %v821_v0  ;;  %v46_v37 = vld [vmem:[%s1229_s0 + $0x70] sm:$0xff]  ;;  %v49_v38 = vld [vmem:[%s1229_s0 + $0x88] sm:$0xff]  ;;  %v48_v39 = vld [vmem:[%s1229_s0 + $0x80] sm:$0xff] }
   0xe   :  { %158 = vmatpush1.msra.mxu0 %v73_v8  ;;  %v51_v40 = vld [vmem:[%s1229_s0 + $0x98] sm:$0xff]  ;;  %v50_v41 = vld [vmem:[%s1229_s0 + $0x90] sm:$0xff]  ;;  %v53_v42 = vld [vmem:[%s1229_s0 + $0xa8] sm:$0xff] }
   0xf   :  { %159 = vmatprep.subr.mxu0 %v821_v0  ;;  %v52_v43 = vld [vmem:[%s1229_s0 + $0xa0] sm:$0xff]  ;;  %v55_v44 = vld [vmem:[%s1229_s0 + $0xb8] sm:$0xff]  ;;  %v54_v45 = vld [vmem:[%s1229_s0 + $0xb0] sm:$0xff] }
  0x10   :  { %160 = vmatpush1.msra.mxu0 %v72_v9  ;;  %v57_v46 = vld [vmem:[%s1229_s0 + $0xc8] sm:$0xff]  ;;  %v56_v47 = vld [vmem:[%s1229_s0 + $0xc0] sm:$0xff]  ;;  %v59_v48 = vld [vmem:[%s1229_s0 + $0xd8] sm:$0xff] }
  0x11   :  { %161 = vmatprep.subr.mxu0 %v821_v0  ;;  %v58_v49 = vld [vmem:[%s1229_s0 + $0xd0] sm:$0xff]  ;;  %v61_v50 = vld [vmem:[%s1229_s0 + $0xe8] sm:$0xff]  ;;  %v60_v51 = vld [vmem:[%s1229_s0 + $0xe0] sm:$0xff] }
  0x12   :  { %162 = vmatpush1.msra.mxu0 %v71_v10  ;;  %v63_v52 = vld [vmem:[%s1229_s0 + $0xf8] sm:$0xff]  ;;  %v62_v53 = vld [vmem:[%s1229_s0 + $0xf0] sm:$0xff]  ;;  %v375_v56 = vld [vmem:[%s1230_s3 + $0x68] sm:$0xff] }
  0x13   :  { %163 = vmatprep.subr.mxu0 %v821_v0  ;;  %v377_v54 = vld [vmem:[%s1230_s3 + $0x78] sm:$0xff]  ;;  %v376_v55 = vld [vmem:[%s1230_s3 + $0x70] sm:$0xff]  ;;  %v374_v57 = vld [vmem:[%s1230_s3 + $0x60] sm:$0xff] }
  0x14   :  { %164 = vmatpush1.msra.mxu0 %v70_v11  ;;  %746 = vmatpush3.msra.mxu1 %v377_v54  ;;  %v373_v58 = vld [vmem:[%s1230_s3 + $0x58] sm:$0xff]  ;;  %v372_v59 = vld [vmem:[%s1230_s3 + $0x50] sm:$0xff]  ;;  %v371_v60 = vld [vmem:[%s1230_s3 + $0x48] sm:$0xff] }
  0x15   :  { %165 = vmatprep.subr.mxu0 %v821_v0  ;;  %747 = vmatprep.subr.mxu1 %v821_v0  ;;  %v370_v61 = vld [vmem:[%s1230_s3 + $0x40] sm:$0xff]  ;;  %v369_v62 = vld [vmem:[%s1230_s3 + $0x38] sm:$0xff]  ;;  %v368_v63 = vld [vmem:[%s1230_s3 + $0x30] sm:$0xff] }
  0x16   :  { %166 = vmatpush1.msra.mxu0 %v69_v12  ;;  %748 = vmatpush3.msra.mxu1 %v376_v55  ;;  %v367_v1 = vld [vmem:[%s1230_s3 + $0x28] sm:$0xff]  ;;  %v366_v2 = vld [vmem:[%s1230_s3 + $0x20] sm:$0xff]  ;;  %v365_v3 = vld [vmem:[%s1230_s3 + $0x18] sm:$0xff] }
  0x17   :  { %167 = vmatprep.subr.mxu0 %v821_v0  ;;  %749 = vmatprep.subr.mxu1 %v821_v0  ;;  %v364_v4 = vld [vmem:[%s1230_s3 + $0x10] sm:$0xff]  ;;  %v363_v5 = vld [vmem:[%s1230_s3 + $0x8] sm:$0xff]  ;;  %v362_v6 = vld [vmem:[%s1230_s3] sm:$0xff] }
  0x18   :  { %168 = vmatpush1.msra.mxu0 %v68_v13  ;;  %750 = vmatpush3.msra.mxu1 %v375_v56 }
  0x19   :  { %169 = vmatprep.subr.mxu0 %v821_v0  ;;  %751 = vmatprep.subr.mxu1 %v821_v0 }
  0x1a   :  { %170 = vmatpush1.msra.mxu0 %v67_v14  ;;  %752 = vmatpush3.msra.mxu1 %v374_v57 }
  0x1b   :  { %171 = vmatprep.subr.mxu0 %v821_v0  ;;  %753 = vmatprep.subr.mxu1 %v821_v0 }
  0x1c   :  { %172 = vmatpush1.msra.mxu0 %v66_v15  ;;  %754 = vmatpush3.msra.mxu1 %v373_v58 }
  0x1d   :  { %173 = vmatprep.subr.mxu0 %v821_v0  ;;  %755 = vmatprep.subr.mxu1 %v821_v0 }
  0x1e   :  { %174 = vmatpush1.msra.mxu0 %v65_v16  ;;  %756 = vmatpush3.msra.mxu1 %v372_v59 }
  0x1f   :  { %175 = vmatprep.subr.mxu0 %v821_v0  ;;  %757 = vmatprep.subr.mxu1 %v821_v0 }
  0x20   :  { %176 = vmatpush1.msra.mxu0 %v64_v17  ;;  %758 = vmatpush3.msra.mxu1 %v371_v60 }
  0x21   :  { %199 = vmatprep.subr.mxu0 %v821_v0  ;;  %759 = vmatprep.subr.mxu1 %v821_v0 }
  0x22   :  { %692 = vmatpush2.msk.msra.mxu0 %vm141_vm1, %v84_v18  ;;  %760 = vmatpush3.msra.mxu1 %v370_v61 }
  0x23   :  { %201 = vmatprep.subr.mxu0 %v821_v0  ;;  %761 = vmatprep.subr.mxu1 %v821_v0 }
  0x24   :  { %202 = vmatpush2.msra.mxu0 %v83_v19  ;;  %762 = vmatpush3.msra.mxu1 %v369_v62 }
  0x25   :  { %203 = vmatprep.subr.mxu0 %v821_v0  ;;  %763 = vmatprep.subr.mxu1 %v821_v0 }
  0x26   :  { %204 = vmatpush2.msra.mxu0 %v82_v20  ;;  %764 = vmatpush3.msra.mxu1 %v368_v63 }
  0x27   :  { %205 = vmatprep.subr.mxu0 %v821_v0  ;;  %765 = vmatprep.subr.mxu1 %v821_v0 }
  0x28   :  { %206 = vmatpush2.msra.mxu0 %v81_v21  ;;  %766 = vmatpush3.msra.mxu1 %v367_v1 }
  0x29   :  { %207 = vmatprep.subr.mxu0 %v821_v0  ;;  %767 = vmatprep.subr.mxu1 %v821_v0 }
  0x2a   :  { %208 = vmatpush2.msra.mxu0 %v80_v22  ;;  %768 = vmatpush3.msra.mxu1 %v366_v2 }
  0x2b   :  { %210 = vmatmul.mubr.f32.vlgmr.msra.gmra.mxu0 %v32_v23  ;;  %769 = vmatprep.subr.mxu1 %v821_v0 }
  0x2c   :  { %694 = vmatprep.mubr.msk.f32.mxu0 %vm92_vm0, %v35_v24  ;;  %770 = vmatpush3.msra.mxu1 %v365_v3 }
  0x2d   :  { %771 = vmatprep.subr.mxu1 %v821_v0 }
  0x2e   :  { %772 = vmatpush3.msra.mxu1 %v364_v4 }
  0x2f   :  { %215 = vmatmul.mubr.f32.gmra.mxu0 %v34_v25  ;;  %773 = vmatprep.subr.mxu1 %v821_v0  ;;  %v1140_v25 = vld [vmem:[%s1231_s2] ss:$0 sm:$0xff] }
  0x30   :  { %695 = vmatprep.mubr.msk.f32.mxu0 %vm92_vm0, %v37_v26  ;;  %774 = vmatpush3.msra.mxu1 %v363_v5 }
  0x31   :  { %775 = vmatprep.subr.mxu1 %v821_v0 }
  0x32   :  { %776 = vmatpush3.msra.mxu1 %v362_v6 }
  0x33   :  { %220 = vmatmul.mubr.f32.gmra.mxu0 %v36_v27  ;;  %780 = vmatprep.subr.mxu1 %v821_v0 }
  0x34   :  { %696 = vmatprep.mubr.msk.f32.mxu0 %vm92_vm0, %v39_v28 }
  0x37   :  { %225 = vmatmul.mubr.f32.gmra.mxu0 %v38_v29 }
  0x38   :  { %697 = vmatprep.mubr.msk.f32.mxu0 %vm92_vm0, %v41_v30 }
  0x3b   :  { %230 = vmatmul.mubr.f32.gmra.mxu0 %v40_v31 }
  0x3c   :  { %698 = vmatprep.mubr.msk.f32.mxu0 %vm92_vm0, %v43_v32 }
  0x3f   :  { %235 = vmatmul.mubr.f32.gmra.mxu0 %v42_v33 }
  0x40   :  { %699 = vmatprep.mubr.msk.f32.mxu0 %vm92_vm0, %v45_v34 }
  0x43   :  { %240 = vmatmul.mubr.f32.gmra.mxu0 %v44_v35 }
  0x44   :  { %700 = vmatprep.mubr.msk.f32.mxu0 %vm92_vm0, %v47_v36 }
  0x47   :  { %245 = vmatmul.mubr.f32.gmra.mxu0 %v46_v37 }
  0x48   :  { %701 = vmatprep.mubr.msk.f32.mxu0 %vm92_vm0, %v49_v38 }
  0x4b   :  { %250 = vmatmul.mubr.f32.gmra.mxu0 %v48_v39 }
  0x4c   :  { %702 = vmatprep.mubr.msk.f32.mxu0 %vm92_vm0, %v51_v40 }
  0x4f   :  { %255 = vmatmul.mubr.f32.gmra.mxu0 %v50_v41 }
  0x50   :  { %703 = vmatprep.mubr.msk.f32.mxu0 %vm92_vm0, %v53_v42 }
  0x53   :  { %260 = vmatmul.mubr.f32.gmra.mxu0 %v52_v43 }
  0x54   :  { %704 = vmatprep.mubr.msk.f32.mxu0 %vm92_vm0, %v55_v44 }
  0x57   :  { %265 = vmatmul.mubr.f32.gmra.mxu0 %v54_v45 }
  0x58   :  { %705 = vmatprep.mubr.msk.f32.mxu0 %vm92_vm0, %v57_v46 }
  0x5b   :  { %270 = vmatmul.mubr.f32.gmra.mxu0 %v56_v47 }
  0x5c   :  { %706 = vmatprep.mubr.msk.f32.mxu0 %vm92_vm0, %v59_v48 }
  0x5f   :  { %275 = vmatmul.mubr.f32.gmra.mxu0 %v58_v49 }
  0x60   :  { %707 = vmatprep.mubr.msk.f32.mxu0 %vm92_vm0, %v61_v50 }
  0x63   :  { %280 = vmatmul.mubr.f32.gmra.mxu0 %v60_v51 }
  0x64   :  { %708 = vmatprep.mubr.msk.f32.mxu0 %vm92_vm0, %v63_v52  ;;  %vm680_vm0 = vcmask 80896  }
  0x67   :  { %285 = vmatmul.mubr.f32.gmra.mxu0 %v62_v53 }
  0xeb   :  { %v211_v7 = vpop.f32.mrf.mxu0 }
  0xec   :  { %v212_v33 = vadd.f32 %v1140_v25, %v211_v7 }
  0xed   :  { %v213_v8 = vpop.f32.mrf.mxu0 }
  0xee   :  { %v290_v46 = vmax.f32 %v212_v33, 0.0 }
  0xef   :  { %v216_v9 = vpop.f32.mrf.mxu0 }
  0xf0   :  { %v217_v28 = vadd.f32 %v1140_v25, %v216_v9 }
  0xf1   :  { %v218_v10 = vpop.f32.mrf.mxu0 }
  0xf2   :  { %v291_v39 = vmax.f32 %v217_v28, 0.0 }
  0xf3   :  { %v221_v11 = vpop.f32.mrf.mxu0 }
  0xf4   :  { %v222_v31 = vadd.f32 %v1140_v25, %v221_v11  ;;  %v306_v53 = vadd.f32 %v291_v39, %v290_v46 }
  0xf5   :  { %v223_v12 = vpop.f32.mrf.mxu0 }
  0xf6   :  { %v292_v43 = vmax.f32 %v222_v31, 0.0  ;;  %v307_v1 = vrot.slane %v306_v53, 4 }
  0xf7   :  { %v226_v13 = vpop.f32.mrf.mxu0 }
  0xf8   :  { %v227_v27 = vadd.f32 %v1140_v25, %v226_v13  ;;  %v308_v11 = vadd.f32 %v307_v1, %v306_v53 }
  0xf9   :  { %v228_v14 = vpop.f32.mrf.mxu0 }
  0xfa   :  { %v293_v37 = vmax.f32 %v227_v27, 0.0 }
  0xfb   :  { %v231_v15 = vpop.f32.mrf.mxu0 }
  0xfc   :  { %v232_v34 = vadd.f32 %v1140_v25, %v231_v15  ;;  %v313_v50 = vadd.f32 %v293_v37, %v292_v43 }
  0xfd   :  { %v233_v16 = vpop.f32.mrf.mxu0 }
  0xfe   :  { %v294_v47 = vmax.f32 %v232_v34, 0.0  ;;  %v314_v62 = vrot.slane %v313_v50, 4 }
  0xff   :  { %v236_v17 = vpop.f32.mrf.mxu0 }
 0x100   :  { %v237_v29 = vadd.f32 %v1140_v25, %v236_v17  ;;  %v315_v8 = vadd.f32 %v314_v62, %v313_v50 }
 0x101   :  { %v238_v18 = vpop.f32.mrf.mxu0 }
 0x102   :  { %v295_v40 = vmax.f32 %v237_v29, 0.0 }
 0x103   :  { %v241_v19 = vpop.f32.mrf.mxu0 }
 0x104   :  { %v242_v38 = vadd.f32 %v1140_v25, %v241_v19  ;;  %v320_v54 = vadd.f32 %v295_v40, %v294_v47  ;;  %v316_v19 = vrot.slane %v315_v8, 2 }
 0x105   :  { %v243_v20 = vpop.f32.mrf.mxu0 }
 0x106   :  { %v296_v51 = vmax.f32 %v242_v38, 0.0  ;;  %v321_v2 = vrot.slane %v320_v54, 4  ;;  %v317_v31 = vadd.f32 %v316_v19, %v315_v8  ;;  %v481_v8 = vld [vmem:[%s1232_s5 + $0x18] sm:$0xff]  ;;  %v569_v19 = vld [vmem:[%s1234_s7 + $0x28] sm:$0xff] }
 0x107   :  { %v246_v21 = vpop.f32.mrf.mxu0 }
 0x108   :  { %v247_v32 = vadd.f32 %v1140_v25, %v246_v21  ;;  %v322_v12 = vadd.f32 %v321_v2, %v320_v54  ;;  %v318_v43 = vrot.slane %v317_v31, 1 }
 0x109   :  { %v248_v22 = vpop.f32.mrf.mxu0 }
 0x10a   :  { %v297_v44 = vmax.f32 %v247_v32, 0.0  ;;  %v309_v22 = vrot.slane %v308_v11, 2 }
 0x10b   :  { %v251_v23 = vpop.f32.mrf.mxu0 }
 0x10c   :  { %v252_v41 = vadd.f32 %v1140_v25, %v251_v23  ;;  %v327_v57 = vadd.f32 %v297_v44, %v296_v51  ;;  %v323_v23 = vrot.slane %v322_v12, 2 }
 0x10d   :  { %v253_v24 = vpop.f32.mrf.mxu0 }
 0x10e   :  { %v298_v55 = vmax.f32 %v252_v41, 0.0  ;;  %v328_v4 = vrot.slane %v327_v57, 4 }
 0x10f   :  { %v256_v26 = vpop.f32.mrf.mxu0 }
 0x110   :  { %v257_v35 = vadd.f32 %v1140_v25, %v256_v26  ;;  %v329_v14 = vadd.f32 %v328_v4, %v327_v57 }
 0x111   :  { %v258_v30 = vpop.f32.mrf.mxu0 }
 0x112   :  { %v299_v48 = vmax.f32 %v257_v35, 0.0  ;;  %v330_v26 = vrot.slane %v329_v14, 2  ;;  %v310_v35 = vadd.f32 %v309_v22, %v308_v11  ;;  %v479_v11 = vld [vmem:[%s1232_s5 + $0x8] sm:$0xff]  ;;  %v566_v22 = vld [vmem:[%s1234_s7 + $0x10] sm:$0xff] }
 0x113   :  { %v261_v36 = vpop.f32.mrf.mxu0 }
 0x114   :  { %v262_v45 = vadd.f32 %v1140_v25, %v261_v36  ;;  %v334_v60 = vadd.f32 %v299_v48, %v298_v55  ;;  %v324_v36 = vadd.f32 %v323_v23, %v322_v12  ;;  %v331_v38 = vadd.f32 %v330_v26, %v329_v14  ;;  %v478_v12 = vld [vmem:[%s1232_s5] sm:$0xff]  ;;  %v565_v23 = vld [vmem:[%s1234_s7 + $0x8] sm:$0xff] }
 0x115   :  { %v263_v42 = vpop.f32.mrf.mxu0  ;;  %v311_v48 = vrot.slane %v310_v35, 1  ;;  %v710_v26 = vld [vmem:[%s1235_s6] ss:$0 sm:$0xff]  ;;  %s823_s6 = smov 112  }
 0x116   :  { %v300_v58 = vmax.f32 %v262_v45, 0.0  ;;  %v335_v6 = vrot.slane %v334_v60, 4  ;;  %v325_v46 = vrot.slane %v324_v36, 1 }
 0x117   :  { %v266_v49 = vpop.f32.mrf.mxu0 }
 0x118   :  { %v267_v52 = vadd.f32 %v1140_v25, %v266_v49  ;;  %v336_v17 = vadd.f32 %v335_v6, %v334_v60  ;;  %v332_v49 = vrot.slane %v331_v38, 1  ;;  %v326_v54 = vadd.f32 %v325_v46, %v324_v36 }
 0x119   :  { %v268_v56 = vpop.f32.mrf.mxu0 }
 0x11a   :  { %v301_v59 = vmax.f32 %v267_v52, 0.0  ;;  %v337_v29 = vrot.slane %v336_v17, 2  ;;  %v319_v52 = vadd.f32 %v318_v43, %v317_v31  ;;  %v312_v56 = vadd.f32 %v311_v48, %v310_v35  ;;  %v712_v31 = vld [vmem:[%s1236_s8] ss:$0 sm:$0xff] }
 0x11b   :  { %v271_v61 = vpop.f32.mrf.mxu0  ;;  %v333_v57 = vadd.f32 %v332_v49, %v331_v38 }
 0x11c   :  { %v341_v63 = vadd.f32 %v301_v59, %v300_v58  ;;  %v272_v5 = vadd.f32 %v1140_v25, %v271_v61  ;;  %v338_v42 = vadd.f32 %v337_v29, %v336_v17  ;;  %v394_v60 = vsel %vm393_vm3, %v319_v52, %v312_v56 }
 0x11d   :  { %v273_v3 = vpop.f32.mrf.mxu0  ;;  %v396_v1 = vsel %vm395_vm4, %v326_v54, %v394_v60 }
 0x11e   :  { %v342_v9 = vrot.slane %v341_v63, 4  ;;  %v302_v15 = vmax.f32 %v272_v5, 0.0  ;;  %v339_v51 = vrot.slane %v338_v42, 1  ;;  %v398_v3 = vsel %vm397_vm5, %v333_v57, %v396_v1 }
 0x11f   :  { %v276_v7 = vpop.f32.mrf.mxu0 }
 0x120   :  { %v277_v10 = vadd.f32 %v1140_v25, %v276_v7  ;;  %v343_v20 = vadd.f32 %v342_v9, %v341_v63  ;;  %v340_v59 = vadd.f32 %v339_v51, %v338_v42 }
 0x121   :  { %v278_v13 = vpop.f32.mrf.mxu0 }
 0x122   :  { %v303_v16 = vmax.f32 %v277_v10, 0.0  ;;  %v344_v32 = vrot.slane %v343_v20, 2  ;;  %v400_v4 = vsel %vm399_vm6, %v340_v59, %v398_v3  ;;  %v480_v10 = vld [vmem:[%s1232_s5 + $0x10] sm:$0xff]  ;;  %v709_v13 = vld [vmem:[%s1233_s4] ss:$0 sm:$0xff] }
 0x123   :  { %v281_v18 = vpop.f32.mrf.mxu0 }
 0x124   :  { %v348_v21 = vadd.f32 %v303_v16, %v302_v15  ;;  %v282_v28 = vadd.f32 %v1140_v25, %v281_v18  ;;  %v345_v44 = vadd.f32 %v344_v32, %v343_v20  ;;  %v571_v16 = vld [vmem:[%s1234_s7 + $0x38] sm:$0xff]  ;;  %v570_v18 = vld [vmem:[%s1234_s7 + $0x30] sm:$0xff]  ;;  %v568_v20 = vld [vmem:[%s1234_s7 + $0x20] sm:$0xff] }
 0x125   :  { %v283_v24 = vpop.f32.mrf.mxu0 }
 0x126   :  { %v349_v27 = vrot.slane %v348_v21, 4  ;;  %v304_v40 = vmax.f32 %v282_v28, 0.0  ;;  %v346_v53 = vrot.slane %v345_v44, 1  ;;  %v564_v24 = vld [vmem:[%s1234_s7] sm:$0xff] }
 0x127   :  { %v286_v30 = vpop.f32.mrf.mxu0 }
 0x128   :  { %v350_v33 = vadd.f32 %v349_v27, %v348_v21  ;;  %v287_v34 = vadd.f32 %v1140_v25, %v286_v30  ;;  %v347_v61 = vadd.f32 %v346_v53, %v345_v44  ;;  %v567_v21 = vld [vmem:[%s1234_s7 + $0x18] sm:$0xff] }
 0x129   :  { %v288_v37 = vpop.f32.mrf.mxu0 }
 0x12a   :  { %v351_v39 = vrot.slane %v350_v33, 2  ;;  %v305_v41 = vmax.f32 %v287_v34, 0.0  ;;  %v402_v6 = vsel %vm401_vm7, %v347_v61, %v400_v4 }
 0x12c   :  { %v355_v45 = vadd.f32 %v305_v41, %v304_v40  ;;  %v352_v47 = vadd.f32 %v351_v39, %v350_v33 }
 0x12e   :  { %v356_v50 = vrot.slane %v355_v45, 4  ;;  %v353_v55 = vrot.slane %v352_v47, 1 }
 0x130   :  { %v357_v25 = vadd.f32 %v356_v50, %v355_v45  ;;  %v354_v63 = vadd.f32 %v353_v55, %v352_v47 }
 0x132   :  { %v358_v58 = vrot.slane %v357_v25, 2  ;;  %v404_v7 = vsel %vm403_vm8, %v354_v63, %v402_v6 }
 0x134   :  { %v359_v62 = vadd.f32 %v358_v58, %v357_v25 }
 0x136   :  { %v360_v2 = vrot.slane %v359_v62, 1 }
 0x138   :  { %v361_v5 = vadd.f32 %v360_v2, %v359_v62 }
 0x13a   :  { %v406_v9 = vsel %vm405_vm9, %v361_v5, %v404_v7 }
 0x13b   :  { %778 = vmatmul.mubr.f32.vlgmr.msra.gmra.mxu1 %v406_v9 }
 0x13c   :  { %781 = vmatpush3.msra.mxu1 %v481_v8  ;;  %788 = vmatprep.mubr.msk.f32.mxu1 %vm822_vm2, %v821_v0 }
 0x13d   :  { %782 = vmatprep.subr.mxu1 %v821_v0 }
 0x13e   :  { %783 = vmatpush3.msra.mxu1 %v480_v10 }
 0x13f   :  { %784 = vmatprep.subr.mxu1 %v821_v0 }
 0x140   :  { %785 = vmatpush3.msra.mxu1 %v479_v11 }
 0x141   :  { %786 = vmatprep.subr.mxu1 %v821_v0 }
 0x142   :  { %787 = vmatpush3.msra.mxu1 %v478_v12 }
 0x143   :  { %791 = vmatprep.subr.mxu1 %v821_v0 }
 0x1fb   :  { %v474_v14 = vpop.f32.mrf.mxu1 }
 0x1fc   :  { %v475_v15 = vadd.f32 %v709_v13, %v474_v14 }
 0x1fd   :  { %v779_v17 = vpop.f32.mrf.mxu1 }
 0x1fe   :  { %789 = vmatmul.mubr.msk.f32.vlgmr.msra.gmra.mxu1 %vm489_vm10, %v475_v15 }
 0x1ff   :  { %792 = vmatpush3.msra.mxu1 %v571_v16  ;;  %807 = vmatprep.mubr.msk.f32.mxu1 %vm822_vm2, %v821_v0 }
 0x200   :  { %793 = vmatprep.subr.mxu1 %v821_v0 }
 0x201   :  { %794 = vmatpush3.msra.mxu1 %v570_v18 }
 0x202   :  { %795 = vmatprep.subr.mxu1 %v821_v0 }
 0x203   :  { %796 = vmatpush3.msra.mxu1 %v569_v19 }
 0x204   :  { %797 = vmatprep.subr.mxu1 %v821_v0 }
 0x205   :  { %798 = vmatpush3.msra.mxu1 %v568_v20 }
 0x206   :  { %799 = vmatprep.subr.mxu1 %v821_v0 }
 0x207   :  { %800 = vmatpush3.msra.mxu1 %v567_v21 }
 0x208   :  { %801 = vmatprep.subr.mxu1 %v821_v0 }
 0x209   :  { %802 = vmatpush3.msra.mxu1 %v566_v22 }
 0x20a   :  { %803 = vmatprep.subr.mxu1 %v821_v0 }
 0x20b   :  { %804 = vmatpush3.msra.mxu1 %v565_v23 }
 0x20c   :  { %805 = vmatprep.subr.mxu1 %v821_v0 }
 0x20d   :  { %806 = vmatpush3.msra.mxu1 %v564_v24 }
 0x2be   :  { %v559_v27 = vpop.f32.mrf.mxu1 }
 0x2bf   :  { %v560_v28 = vadd.f32 %v710_v26, %v559_v27 }
 0x2c0   :  { %v790_v29 = vpop.f32.mrf.mxu1 }
 0x2c1   :  { %v563_v30 = vmax.f32 %v560_v28, 0.0 }
 0x2c3   :  { %808 = vmatmul.mubr.msk.f32.vlgmr.msra.gmra.mxu1 %vm579_vm11, %v563_v30 }
 0x383   :  { %v649_v0 = vpop.f32.mrf.mxu1 }
 0x384   :  { %v650_v32 = vadd.f32 %v712_v31, %v649_v0 }
 0x385   :  { %v809_v33 = vpop.f32.mrf.mxu1 }
 0x386   :  { %v670_v34 = vsel %vm669_vm12, %v650_v32, -inf  ;;  %v653_v35 = vmul.f32 %v650_v32, %v650_v32 }
 0x387   :  { %671 = vmax.xlane.f32.xlu0 %v670_v34 }
 0x388   :  { %v655_v36 = vsel %vm654_vm13, %v653_v35, 0.0 }
 0x389   :  { %656 = vadd.xlane.f32.xlu1 %v655_v36 }
 0x410   :  { %v672_v37 = vpop.xlane.xlu0 %671 }
 0x411   :  { %v673_v38 = vsub.f32 %v650_v32, %v672_v37 }
 0x412   :  { %v657_v39 = vpop.xlane.xlu1 %656 }
 0x413   :  { %v674_v40 = vmul.f32 1.442695, %v673_v38  ;;  %813 = vrsqrt.f32 %v657_v39  ;;  %vm660_vm14 = vcmp.eq.f32.partialorder %v657_v39, inf  ;;  %v663_v44 = vand.u32 2147483648, %v657_v39 }
 0x414   :  { %vm662_vm15 = vcmp.eq.f32.partialorder %v657_v39, 0.0 }
 0x415   :  { %815 = vpow2.f32 %v674_v40 }
 0x420   :  { %v814_v41 = vpop.eup %813 }
 0x421   :  { %v659_v42 = vmul.f32 %v814_v41, %v657_v39 }
 0x422   :  { %v816_v43 = vpop.eup %815 }
 0x423   :  { %v661_v45 = vsel %vm660_vm14, %v657_v39, %v659_v42  ;;  %677 = vrot.lane.b32.xlu0 %v816_v43, %s823_s6 }
 0x424   :  { %v664_v46 = vsel %vm662_vm15, %v663_v44, %v661_v45 }
 0x425   :  { %v665_v47 = vmax.f32 %v664_v46, 1e-12 }
 0x427   :  { %817 = vrcp.f32 %v665_v47 }
 0x434   :  { %v818_v48 = vpop.eup %817 }
 0x435   :  { %v667_v49 = vmul.f32 %v818_v48, %v650_v32 }
 0x437   :  { %668 = vst.msk [vmem:[%s1237_s9] sm:$0xff] %vm654_vm13, %v667_v49 }
 0x495   :  { %v678_v50 = vpop.permute.xlu0 %677 }
 0x496   :  { %v681_v51 = vsel %vm680_vm0, %v678_v50, 0.0 }
 0x497   :  { %682 = vadd.xlane.f32.xlu1 %v681_v51 }
 0x520   :  { %v683_v52 = vpop.xlane.xlu1 %682 }
 0x521   :  { %819 = vrcp.f32 %v683_v52 }
 0x52e   :  { %v820_v53 = vpop.eup %819 }
 0x52f   :  { %v685_v25 = vmul.f32 %v820_v53, %v816_v43 }
 0x531   :  { %686 = vst.msk [vmem:[%s1237_s9] sm:$0xff] %vm669_vm12, %v685_v25 }

</bundles_post_ra>
